<compile_context>
chip_gen: v5e
topology: v5e:2x2
jax: 0.10.0
libtpu: 0.0.40
codegen_flags: <defaults>
</compile_context>

<pallas_src>
import jax
import jax.numpy as jnp
import numpy as np
from jax import lax
from jax.experimental import pallas as pl
from jax.experimental.pallas import tpu as pltpu


# ----------------------------------------------------------------------------
# Noised wrapper forward (pass-through to the wrapped Conv2d)
# ----------------------------------------------------------------------------
def noised_forward(x, weight, bias):
    """x: (N, C, H, W) f32. weight: (OC, C, 3, 3) f32. bias: (OC,) f32."""
    N, C, H, W = x.shape
    OC, _, KH, KW = weight.shape
    assert (KH, KW) == (3, 3), "representative wrapped layer is a 3x3 conv"
    M = H * W                      # flattened output positions per image
    L = (H + 2) * W + 2            # H-padded, flattened, +1 guard on each end

    # --- cheap glue (single ~1x pad/reshape, no 9x patches array) ---
    x_h = jnp.pad(x, ((0, 0), (0, 0), (1, 1), (0, 0)))          # (N, C, H+2, W)
    xf = jnp.pad(x_h.reshape(N, C, (H + 2) * W),
                 ((0, 0), (0, 0), (1, 1)))                      # (N, C, L)
    w_taps = jnp.transpose(weight, (2, 3, 0, 1)).reshape(KH * KW, OC, C)
    b_col = bias.reshape(OC, 1)

    def kernel(x_ref, w_ref, b_ref, o_ref):
        # x_ref: (1, C, L)   flattened padded image for this batch element
        # w_ref: (9, OC, C)  per-tap weight matrices
        # b_ref: (OC, 1)     bias
        # o_ref: (1, OC, M)  lane-dense output slab (M = H*W)
        xv = x_ref[0]                                            # (C, L)

        # Width-halo masks: tap kw=0 must not read the previous row's last
        # column at w==0; tap kw=2 must not read the next row's first column
        # at w==W-1.  Hoisted out of the tap loop.
        col = lax.broadcasted_iota(jnp.int32, (1, M), 1) % W
        keep_l = col != 0
        keep_r = col != (W - 1)

        # Bias folded into the accumulator init (one broadcast per tile).
        acc = jnp.broadcast_to(b_ref[...], (OC, M)).astype(jnp.float32)

        # 9 shifted taps: static lane-slices of the VMEM-resident image,
        # each an accumulated (OC, C) @ (C, M) MXU dot (f32 accumulate).
        for t in range(KH * KW):
            kh, kw = t // KW, t % KW
            s = kh * W + kw
            tap = xv[:, s:s + M]                                 # (C, M)
            if kw == 0:
                tap = jnp.where(keep_l, tap, 0.0)
            elif kw == KW - 1:
                tap = jnp.where(keep_r, tap, 0.0)
            acc = acc + jnp.dot(w_ref[t], tap,
                                preferred_element_type=jnp.float32)

        o_ref[0] = acc.astype(o_ref.dtype)

    flops = 2 * N * M * OC * C * KH * KW
    bytes_accessed = 4 * (N * C * L + KH * KW * OC * C + OC + N * OC * M)

    out_flat = pl.pallas_call(
        kernel,
        out_shape=jax.ShapeDtypeStruct((N, OC, M), jnp.float32),
        grid_spec=pl.GridSpec(
            grid=(N,),
            in_specs=[
                pl.BlockSpec((1, C, L), lambda n: (n, 0, 0)),
                pl.BlockSpec((KH * KW, OC, C), lambda n: (0, 0, 0)),
                pl.BlockSpec((OC, 1), lambda n: (0, 0)),
            ],
            out_specs=pl.BlockSpec((1, OC, M), lambda n: (n, 0, 0)),
        ),
        compiler_params=pltpu.CompilerParams(
            dimension_semantics=("parallel",)),
        cost_estimate=pl.CostEstimate(
            flops=flops, transcendentals=0, bytes_accessed=bytes_accessed),
    )(xf, w_taps, b_col)

    # (N, OC, H*W) -> (N, OC, H, W): trailing-dim reshape, no transpose.
    return out_flat.reshape(N, OC, H, W)


if __name__ == "__main__":
    key = jax.random.PRNGKey(0)
    kx, kw_, kb = jax.random.split(key, 3)

    N, C, H, W = 2, 4, 16, 16
    OC, KH, KW = 8, 3, 3

    x = jax.random.normal(kx, (N, C, H, W), dtype=jnp.float32)

    # Deterministic PyTorch-Conv2d-like uniform init.
    fan_in = C * KH * KW
    bound = 1.0 / np.sqrt(fan_in)
    weight = jax.random.uniform(kw_, (OC, C, KH, KW), jnp.float32,
                                minval=-bound, maxval=bound)
    bias = jax.random.uniform(kb, (OC,), jnp.float32,
                              minval=-bound, maxval=bound)

    y = noised_forward(x, weight, bias)
    y = jax.block_until_ready(y)

    # Reference: XLA conv with identical semantics (nn.Conv2d, NCHW).
    y_ref = lax.conv_general_dilated(
        x, weight, window_strides=(1, 1), padding=((1, 1), (1, 1)),
        dimension_numbers=("NCHW", "OIHW", "NCHW")) + bias.reshape(1, OC, 1, 1)
    y_ref = jax.block_until_ready(y_ref)

    assert y.shape == (N, OC, H, W)
    assert np.allclose(np.asarray(y), np.asarray(y_ref), atol=1e-4, rtol=1e-4)

    print("KERNEL_OK")
</pallas_src>

<mosaic_0001>
module attributes {stable_mosaic.version = 11 : i64} {
  func.func @kernel(%arg0: i32, %arg1: memref<1x4x290xf32, #tpu.memory_space<vmem>>, %arg2: memref<9x8x4xf32, #tpu.memory_space<vmem>>, %arg3: memref<8x1xf32, #tpu.memory_space<vmem>>, %arg4: memref<1x8x256xf32, #tpu.memory_space<vmem>>) attributes {dimension_semantics = [#tpu.dimension_semantics<parallel>], iteration_bounds = array<i64: 2>, scalar_prefetch = 0 : i64, scratch_operands = 0 : i64, tpu.core_type = #tpu.core_type<tc>, window_params = [{transform_indices = @transform_0, window_bounds = array<i64: 1, 4, 290>}, {pipeline_mode = #tpu.pipeline_mode<synchronous>, transform_indices = @transform_1, window_bounds = array<i64: 9, 8, 4>}, {pipeline_mode = #tpu.pipeline_mode<synchronous>, transform_indices = @transform_2, window_bounds = array<i64: 8, 1>}, {transform_indices = @transform_3, window_bounds = array<i64: 1, 8, 256>}]} {
    %c0 = arith.constant 0 : index
    %c0_0 = arith.constant 0 : index
    %c0_1 = arith.constant 0 : index
    %0 = vector.load %arg1[%c0, %c0_0, %c0_1] : memref<1x4x290xf32, #tpu.memory_space<vmem>>, vector<1x4x290xf32>
    %1 = vector.shape_cast %0 : vector<1x4x290xf32> to vector<4x290xf32>
    %2 = tpu.iota {dimensions = array<i32: 1>} : vector<1x256xi32>
    %c16_i32 = arith.constant 16 : i32
    %c0_i32 = arith.constant 0 : i32
    %3 = arith.cmpi eq, %c16_i32, %c0_i32 : i32
    %c1_i32 = arith.constant 1 : i32
    %4 = arith.select %3, %c1_i32, %c16_i32 : i32
    %5 = vector.broadcast %4 : i32 to vector<1x256xi32>
    %6 = arith.remsi %2, %5 : vector<1x256xi32>
    %c0_i32_2 = arith.constant 0 : i32
    %7 = vector.broadcast %c0_i32_2 : i32 to vector<1x256xi32>
    %8 = arith.cmpi ne, %6, %7 : vector<1x256xi32>
    %c0_i32_3 = arith.constant 0 : i32
    %9 = vector.broadcast %c0_i32_3 : i32 to vector<1x256xi32>
    %10 = arith.cmpi slt, %6, %9 : vector<1x256xi32>
    %c0_i32_4 = arith.constant 0 : i32
    %11 = arith.cmpi slt, %4, %c0_i32_4 : i32
    %12 = vector.broadcast %11 : i1 to vector<1x256xi1>
    %13 = vector.broadcast %12 : vector<1x256xi1> to vector<1x256xi1>
    %14 = arith.xori %10, %13 : vector<1x256xi1>
    %15 = arith.andi %14, %8 : vector<1x256xi1>
    %16 = vector.broadcast %4 : i32 to vector<1x256xi32>
    %17 = arith.addi %6, %16 : vector<1x256xi32>
    %18 = arith.select %15, %17, %6 : vector<1x256xi1>, vector<1x256xi32>
    %c0_i32_5 = arith.constant 0 : i32
    %19 = vector.broadcast %c0_i32_5 : i32 to vector<1x256xi32>
    %20 = arith.cmpi ne, %18, %19 : vector<1x256xi32>
    %c15_i32 = arith.constant 15 : i32
    %21 = vector.broadcast %c15_i32 : i32 to vector<1x256xi32>
    %22 = arith.cmpi ne, %18, %21 : vector<1x256xi32>
    %c0_6 = arith.constant 0 : index
    %c0_7 = arith.constant 0 : index
    %23 = vector.load %arg3[%c0_6, %c0_7] : memref<8x1xf32, #tpu.memory_space<vmem>>, vector<8x1xf32>
    %24 = vector.shape_cast %23 : vector<8x1xf32> to vector<8x1xf32>
    %25 = vector.broadcast %24 : vector<8x1xf32> to vector<8x256xf32>
    %26 = vector.extract_strided_slice %1 {offsets = [0, 0], sizes = [4, 256], strides = [1, 1]} : vector<4x290xf32> to vector<4x256xf32>
    %cst = arith.constant 0.000000e+00 : f32
    %27 = vector.shape_cast %20 : vector<1x256xi1> to vector<1x256xi1>
    %28 = vector.broadcast %27 : vector<1x256xi1> to vector<4x256xi1>
    %29 = vector.broadcast %cst : f32 to vector<4x256xf32>
    %30 = arith.select %28, %26, %29 : vector<4x256xi1>, vector<4x256xf32>
    %c0_8 = arith.constant 0 : index
    %c0_9 = arith.constant 0 : index
    %c0_10 = arith.constant 0 : index
    %31 = vector.load %arg2[%c0_8, %c0_9, %c0_10] : memref<9x8x4xf32, #tpu.memory_space<vmem>>, vector<1x8x4xf32>
    %32 = vector.shape_cast %31 : vector<1x8x4xf32> to vector<8x4xf32>
    %cst_11 = arith.constant dense<0.000000e+00> : vector<8x256xf32>
    %33 = tpu.matmul %32, %30, %cst_11 {dimension_numbers = #tpu.dot_dimension_numbers<[1], [0], [0], [1], [0, 0, 1, 1], [], []>} : vector<8x4xf32>, vector<4x256xf32>, vector<8x256xf32> -> vector<8x256xf32>
    %34 = arith.addf %25, %33 : vector<8x256xf32>
    %35 = vector.extract_strided_slice %1 {offsets = [0, 1], sizes = [4, 256], strides = [1, 1]} : vector<4x290xf32> to vector<4x256xf32>
    %c1 = arith.constant 1 : index
    %c0_12 = arith.constant 0 : index
    %c0_13 = arith.constant 0 : index
    %36 = vector.load %arg2[%c1, %c0_12, %c0_13] : memref<9x8x4xf32, #tpu.memory_space<vmem>>, vector<1x8x4xf32>
    %37 = vector.shape_cast %36 : vector<1x8x4xf32> to vector<8x4xf32>
    %cst_14 = arith.constant dense<0.000000e+00> : vector<8x256xf32>
    %38 = tpu.matmul %37, %35, %cst_14 {dimension_numbers = #tpu.dot_dimension_numbers<[1], [0], [0], [1], [0, 0, 1, 1], [], []>} : vector<8x4xf32>, vector<4x256xf32>, vector<8x256xf32> -> vector<8x256xf32>
    %39 = arith.addf %34, %38 : vector<8x256xf32>
    %40 = vector.extract_strided_slice %1 {offsets = [0, 2], sizes = [4, 256], strides = [1, 1]} : vector<4x290xf32> to vector<4x256xf32>
    %cst_15 = arith.constant 0.000000e+00 : f32
    %41 = vector.shape_cast %22 : vector<1x256xi1> to vector<1x256xi1>
    %42 = vector.broadcast %41 : vector<1x256xi1> to vector<4x256xi1>
    %43 = vector.broadcast %cst_15 : f32 to vector<4x256xf32>
    %44 = arith.select %42, %40, %43 : vector<4x256xi1>, vector<4x256xf32>
    %c2 = arith.constant 2 : index
    %c0_16 = arith.constant 0 : index
    %c0_17 = arith.constant 0 : index
    %45 = vector.load %arg2[%c2, %c0_16, %c0_17] : memref<9x8x4xf32, #tpu.memory_space<vmem>>, vector<1x8x4xf32>
    %46 = vector.shape_cast %45 : vector<1x8x4xf32> to vector<8x4xf32>
    %cst_18 = arith.constant dense<0.000000e+00> : vector<8x256xf32>
    %47 = tpu.matmul %46, %44, %cst_18 {dimension_numbers = #tpu.dot_dimension_numbers<[1], [0], [0], [1], [0, 0, 1, 1], [], []>} : vector<8x4xf32>, vector<4x256xf32>, vector<8x256xf32> -> vector<8x256xf32>
    %48 = arith.addf %39, %47 : vector<8x256xf32>
    %49 = vector.extract_strided_slice %1 {offsets = [0, 16], sizes = [4, 256], strides = [1, 1]} : vector<4x290xf32> to vector<4x256xf32>
    %cst_19 = arith.constant 0.000000e+00 : f32
    %50 = vector.shape_cast %20 : vector<1x256xi1> to vector<1x256xi1>
    %51 = vector.broadcast %50 : vector<1x256xi1> to vector<4x256xi1>
    %52 = vector.broadcast %cst_19 : f32 to vector<4x256xf32>
    %53 = arith.select %51, %49, %52 : vector<4x256xi1>, vector<4x256xf32>
    %c3 = arith.constant 3 : index
    %c0_20 = arith.constant 0 : index
    %c0_21 = arith.constant 0 : index
    %54 = vector.load %arg2[%c3, %c0_20, %c0_21] : memref<9x8x4xf32, #tpu.memory_space<vmem>>, vector<1x8x4xf32>
    %55 = vector.shape_cast %54 : vector<1x8x4xf32> to vector<8x4xf32>
    %cst_22 = arith.constant dense<0.000000e+00> : vector<8x256xf32>
    %56 = tpu.matmul %55, %53, %cst_22 {dimension_numbers = #tpu.dot_dimension_numbers<[1], [0], [0], [1], [0, 0, 1, 1], [], []>} : vector<8x4xf32>, vector<4x256xf32>, vector<8x256xf32> -> vector<8x256xf32>
    %57 = arith.addf %48, %56 : vector<8x256xf32>
    %58 = vector.extract_strided_slice %1 {offsets = [0, 17], sizes = [4, 256], strides = [1, 1]} : vector<4x290xf32> to vector<4x256xf32>
    %c4 = arith.constant 4 : index
    %c0_23 = arith.constant 0 : index
    %c0_24 = arith.constant 0 : index
    %59 = vector.load %arg2[%c4, %c0_23, %c0_24] : memref<9x8x4xf32, #tpu.memory_space<vmem>>, vector<1x8x4xf32>
    %60 = vector.shape_cast %59 : vector<1x8x4xf32> to vector<8x4xf32>
    %cst_25 = arith.constant dense<0.000000e+00> : vector<8x256xf32>
    %61 = tpu.matmul %60, %58, %cst_25 {dimension_numbers = #tpu.dot_dimension_numbers<[1], [0], [0], [1], [0, 0, 1, 1], [], []>} : vector<8x4xf32>, vector<4x256xf32>, vector<8x256xf32> -> vector<8x256xf32>
    %62 = arith.addf %57, %61 : vector<8x256xf32>
    %63 = vector.extract_strided_slice %1 {offsets = [0, 18], sizes = [4, 256], strides = [1, 1]} : vector<4x290xf32> to vector<4x256xf32>
    %cst_26 = arith.constant 0.000000e+00 : f32
    %64 = vector.shape_cast %22 : vector<1x256xi1> to vector<1x256xi1>
    %65 = vector.broadcast %64 : vector<1x256xi1> to vector<4x256xi1>
    %66 = vector.broadcast %cst_26 : f32 to vector<4x256xf32>
    %67 = arith.select %65, %63, %66 : vector<4x256xi1>, vector<4x256xf32>
    %c5 = arith.constant 5 : index
    %c0_27 = arith.constant 0 : index
    %c0_28 = arith.constant 0 : index
    %68 = vector.load %arg2[%c5, %c0_27, %c0_28] : memref<9x8x4xf32, #tpu.memory_space<vmem>>, vector<1x8x4xf32>
    %69 = vector.shape_cast %68 : vector<1x8x4xf32> to vector<8x4xf32>
    %cst_29 = arith.constant dense<0.000000e+00> : vector<8x256xf32>
    %70 = tpu.matmul %69, %67, %cst_29 {dimension_numbers = #tpu.dot_dimension_numbers<[1], [0], [0], [1], [0, 0, 1, 1], [], []>} : vector<8x4xf32>, vector<4x256xf32>, vector<8x256xf32> -> vector<8x256xf32>
    %71 = arith.addf %62, %70 : vector<8x256xf32>
    %72 = vector.extract_strided_slice %1 {offsets = [0, 32], sizes = [4, 256], strides = [1, 1]} : vector<4x290xf32> to vector<4x256xf32>
    %cst_30 = arith.constant 0.000000e+00 : f32
    %73 = vector.shape_cast %20 : vector<1x256xi1> to vector<1x256xi1>
    %74 = vector.broadcast %73 : vector<1x256xi1> to vector<4x256xi1>
    %75 = vector.broadcast %cst_30 : f32 to vector<4x256xf32>
    %76 = arith.select %74, %72, %75 : vector<4x256xi1>, vector<4x256xf32>
    %c6 = arith.constant 6 : index
    %c0_31 = arith.constant 0 : index
    %c0_32 = arith.constant 0 : index
    %77 = vector.load %arg2[%c6, %c0_31, %c0_32] : memref<9x8x4xf32, #tpu.memory_space<vmem>>, vector<1x8x4xf32>
    %78 = vector.shape_cast %77 : vector<1x8x4xf32> to vector<8x4xf32>
    %cst_33 = arith.constant dense<0.000000e+00> : vector<8x256xf32>
    %79 = tpu.matmul %78, %76, %cst_33 {dimension_numbers = #tpu.dot_dimension_numbers<[1], [0], [0], [1], [0, 0, 1, 1], [], []>} : vector<8x4xf32>, vector<4x256xf32>, vector<8x256xf32> -> vector<8x256xf32>
    %80 = arith.addf %71, %79 : vector<8x256xf32>
    %81 = vector.extract_strided_slice %1 {offsets = [0, 33], sizes = [4, 256], strides = [1, 1]} : vector<4x290xf32> to vector<4x256xf32>
    %c7 = arith.constant 7 : index
    %c0_34 = arith.constant 0 : index
    %c0_35 = arith.constant 0 : index
    %82 = vector.load %arg2[%c7, %c0_34, %c0_35] : memref<9x8x4xf32, #tpu.memory_space<vmem>>, vector<1x8x4xf32>
    %83 = vector.shape_cast %82 : vector<1x8x4xf32> to vector<8x4xf32>
    %cst_36 = arith.constant dense<0.000000e+00> : vector<8x256xf32>
    %84 = tpu.matmul %83, %81, %cst_36 {dimension_numbers = #tpu.dot_dimension_numbers<[1], [0], [0], [1], [0, 0, 1, 1], [], []>} : vector<8x4xf32>, vector<4x256xf32>, vector<8x256xf32> -> vector<8x256xf32>
    %85 = arith.addf %80, %84 : vector<8x256xf32>
    %86 = vector.extract_strided_slice %1 {offsets = [0, 34], sizes = [4, 256], strides = [1, 1]} : vector<4x290xf32> to vector<4x256xf32>
    %cst_37 = arith.constant 0.000000e+00 : f32
    %87 = vector.shape_cast %22 : vector<1x256xi1> to vector<1x256xi1>
    %88 = vector.broadcast %87 : vector<1x256xi1> to vector<4x256xi1>
    %89 = vector.broadcast %cst_37 : f32 to vector<4x256xf32>
    %90 = arith.select %88, %86, %89 : vector<4x256xi1>, vector<4x256xf32>
    %c8 = arith.constant 8 : index
    %c0_38 = arith.constant 0 : index
    %c0_39 = arith.constant 0 : index
    %91 = vector.load %arg2[%c8, %c0_38, %c0_39] : memref<9x8x4xf32, #tpu.memory_space<vmem>>, vector<1x8x4xf32>
    %92 = vector.shape_cast %91 : vector<1x8x4xf32> to vector<8x4xf32>
    %cst_40 = arith.constant dense<0.000000e+00> : vector<8x256xf32>
    %93 = tpu.matmul %92, %90, %cst_40 {dimension_numbers = #tpu.dot_dimension_numbers<[1], [0], [0], [1], [0, 0, 1, 1], [], []>} : vector<8x4xf32>, vector<4x256xf32>, vector<8x256xf32> -> vector<8x256xf32>
    %94 = arith.addf %85, %93 : vector<8x256xf32>
    %c0_41 = arith.constant 0 : index
    %c0_42 = arith.constant 0 : index
    %c0_43 = arith.constant 0 : index
    %95 = vector.load %arg4[%c0_41, %c0_42, %c0_43] : memref<1x8x256xf32, #tpu.memory_space<vmem>>, vector<1x8x256xf32>
    %96 = vector.shape_cast %95 : vector<1x8x256xf32> to vector<8x256xf32>
    %97 = vector.shape_cast %94 : vector<8x256xf32> to vector<1x8x256xf32>
    tpu.vector_store %arg4[%c0_41, %c0_42, %c0_43], %97 {strides = array<i32>} : memref<1x8x256xf32, #tpu.memory_space<vmem>>, vector<1x8x256xf32>,
    return
  }
  func.func @transform_0(%arg0: i32) -> (i32, i32, i32) {
    %c0_i32 = arith.constant 0 : i32
    %c0_i32_0 = arith.constant 0 : i32
    %c0_i32_1 = arith.constant 0 : i32
    return %arg0, %c0_i32, %c0_i32_0 : i32, i32, i32
  }
  func.func @transform_1(%arg0: i32) -> (i32, i32, i32) {
    %c0_i32 = arith.constant 0 : i32
    %c0_i32_0 = arith.constant 0 : i32
    %c0_i32_1 = arith.constant 0 : i32
    %c0_i32_2 = arith.constant 0 : i32
    return %c0_i32, %c0_i32_0, %c0_i32_1 : i32, i32, i32
  }
  func.func @transform_2(%arg0: i32) -> (i32, i32) {
    %c0_i32 = arith.constant 0 : i32
    %c0_i32_0 = arith.constant 0 : i32
    %c0_i32_1 = arith.constant 0 : i32
    return %c0_i32, %c0_i32_0 : i32, i32
  }
  func.func @transform_3(%arg0: i32) -> (i32, i32, i32) {
    %c0_i32 = arith.constant 0 : i32
    %c0_i32_0 = arith.constant 0 : i32
    %c0_i32_1 = arith.constant 0 : i32
    return %arg0, %c0_i32, %c0_i32_0 : i32, i32, i32
  }
}

</mosaic_0001>

<bundles_post_ra>
// kernel: tpu_custom_call.1
= control target key start
LH: loop header
LB: loop body
LE: loop exit
PB: predicated region body
PF: predicated region fallthrough
CT: control target
= control target key end

     0   :  { %8 = vsyncpa [#allocation3], 0  ;;  %s1324_s0 = inlined_call_operand.vmem [shape: f32[2,4,290], index: 0, kind: input, shape index: {}]   ;;  %s1325_s1 = inlined_call_operand.vmem [shape: f32[9,8,4], index: 1, kind: input, shape index: {}]   ;;  %s1326_s2 = inlined_call_operand.vmem [shape: f32[8,1], index: 2, kind: input, shape index: {}]   ;;  %s1327_s3 = inlined_call_operand.hbm [shape: f32[2,8,256], index: 3, kind: output, shape index: {}]  }
   0x1   :  { %10 = vsyncpa [#allocation3 + $0x1], 0  ;;  %s1114_s12 = smov 0   ;;  %s1116_s13 = smov 0  }
   0x2   :  { %s1118_s14 = smov 0   ;;  %s1120_s15 = smov 0  }
   0x3 LB: > { %s1135_s16 = sadd.s32 4294967295, %s1083_s15   ;;  %s915_s17 = sadd.s32 4294967294, %s1083_s15   ;;  %s1083_s15 = sphi %s1120_s15, %s1341_s15   ;;  %s1079_s14 = sphi %s1118_s14, %s1340_s14   ;;  %s1075_s13 = sphi %s1116_s13, %s1339_s13   ;;  %s1071_s12 = sphi %s1114_s12, %s1338_s12  }
   0x4   : > { %s1139_s18 = sadd.s32 1, %s1083_s15   ;;  %s91_s19 = sadd.s32 1, %s1079_s14 }
   0x5   : > { %s88_s20 = ssub.s32 %s1083_s15, %s1139_s18  ;;  %p101_p0 = scmp.ne.s32.totalorder %s1079_s14, %s1075_s13 }
   0x6   : > { %p89_p1 = scmp.eq.s32.totalorder %s88_s20, 0  ;;  %p102_p2 = scmp.eq.s32.totalorder %s1135_s16, 1 }
   0x7   : > { %p107_p3 = scmp.ne.s32.totalorder %s1075_s13, %s1071_s12  ;;  %p108_p4 = scmp.eq.s32.totalorder %s915_s17, 1 }
   0x8   : > { %s1150_s21 = scalar_select %p89_p1, %s1079_s14, %s91_s19  }
   0x9   : > { %p1152_p5 = por %p102_p2, %p101_p0  ;;  %p1156_p6 = por %p108_p4, %p107_p3 }
   0xa   : > { %p918_p7 = scmp.ge.s32.totalorder %s1083_s15, 1  ;;  %p140_p8 = scmp.lt.s32.totalorder %s1083_s15, 3 }
   0xc   : > { %p141_p9 = pnand %p918_p7, %p140_p8 }
   0xd   : > { %p164_p10 = scmp.lt.s32.totalorder (!%p141_p9), %s1135_s16, 1  ;;  %s1085_s29 = smov (!%p141_p9), 127  }
   0xe   : > { %144 = sbr.rel (%p141_p9) target bundleno = 349 (0x15d), region = 32  ;;  %s1086_s30 = smov (!%p141_p9), 126  }
   0xf   : > { %s1087_s4 = smov (!%p141_p9), 112   ;;  %s1088_s5 = smov (!%p141_p9), 111  }
  0x10   : > { %s1089_s6 = smov (!%p141_p9), 110   ;;  %s1090_s7 = smov (!%p141_p9), 96  }
  0x11   : > { %s1091_s8 = smov (!%p141_p9), 95   ;;  %s1092_s9 = smov (!%p141_p9), 94  }
  0x12   : > { %s161_s17 = sand.u32 (!%p141_p9), 1, %s1075_s13   ;;  %s970_s20 = sshll.u32 (!%p141_p9), %s1135_s16, 4 }
  0x13   : > { %s165_s24 = scalar_select %p164_p10, %s1135_s16, 1  ;;  %v171_v28 = vlaneseq  ;;  %vm225_vm1 = vcmask 1043456   ;;  %vm357_vm3 = vcmask 1031168   ;;  %v220_v42 = vld [vmem:[%s1325_s1] sm:$0xff]  ;;  %vm221_vm5 = vcmask 31744   ;;  %v930_v43 = vld [vmem:[%s1325_s1 + $0x10] sm:$0xff] }
  0x14   : > { %vm289_vm6 = vcmask 1039360   ;;  %v1093_v47 = vmov 0   ;;  %v202_v48 = vld [vmem:[%s1326_s2] sm:$0xff]  ;;  %v925_v52 = vld [vmem:[%s1325_s1 + $0x8] sm:$0xff]  ;;  %vm429_vm8 = vcmask 916480   ;;  %v935_v62 = vld [vmem:[%s1325_s1 + $0x18] sm:$0xff]  ;;  %s851_s26 = scalar_lea.hbm %s1327_s3, %s970_s20 }
  0x15   : > { %s971_s25 = smul.u32 12, %s165_s24  ;;  %v172_v29 = vand.u32 127, %v171_v28  ;;  %1020 = vset.pattern.permute.xlu0 %v1093_v47  ;;  %vm503_vm9 = vcmask 908288   ;;  %vm567_vm10 = vcmask 900096   ;;  %vm639_vm11 = vcmask 785408   ;;  %s919_s19 = sshll.u32 %s161_s17, 4 }
  0x16   : > { %vm713_vm12 = vcmask 777216   ;;  %vm777_vm13 = vcmask 769024   ;;  %s163_s27 = scalar_lea.vmem [#allocation2], %s919_s19  ;;  %s840_s16 = scalar_lea.sflag [#allocation3], %s161_s17 }
  0x17   : > { %s168_s28 = scalar_lea.vmem %s1324_s0, %s971_s25  ;;  %v173_v30 = vadd.s32 128, %v172_v29  ;;  %v178_v34 = vand.u32 15, %v172_v29 }
  0x18   : > { %v170_v0 = vld [vmem:[%s168_s28 + $0x8] sm:$0xf]  ;;  %v1167_v1 = vld [vmem:[%s168_s28] sm:$0xff]  ;;  %s853_s28 = sshll.u32 %s163_s27, 4  ;;  %s854_s28 = int_to_ptr.vmem [resolvable:$true] %s853_s28 }
  0x19   : > { %279 = vst [vmem:[#allocation1 + $0x10] ss:$2 sm:$0xff] %v170_v0  ;;  %v185_v31 = vand.u32 15, %v173_v30  ;;  %vm1190_vm2 = vcmp.ne.s32.totalorder %v178_v34, 0  ;;  %vm1218_vm7 = vcmp.ne.s32.totalorder %v178_v34, 15 }
  0x1a   : > { %213 = vst [vmem:[#allocation1] ss:$2 sm:$0xff] %v1167_v1 }
  0x1b   : > { %vm1182_vm0 = vcmp.ne.s32.totalorder %v185_v31, 0  ;;  %vm1198_vm4 = vcmp.ne.s32.totalorder %v185_v31, 15 }
  0x20   : > { %v282_v2 = vld.sshfl [vmem:[#allocation1 + $0x10] sm:$0xff pattern:$0x75316420] }
  0x21   : > { %287 = vrot.lane.b32.xlu1 %v282_v2, %s1085_s29  ;;  %347 = vst [vmem:[#allocation1 + $0x10] ss:$2 sm:$0xff] %v170_v0  ;;  %v1170_v3 = vld.sshfl [vmem:[#allocation1] sm:$0xff pattern:$0x75316420] }
  0x22   : > { %v1172_v4 = vld.sshfl [vmem:[#allocation1 + $0x8] sm:$0xff pattern:$0x75316420]  ;;  %v218_v37 = vsel %vm1190_vm2, %v1170_v3, 0.0 }
  0x23   : > { %277 = vst [vmem:[#allocation1] ss:$2 sm:$0xff] %v1167_v1  ;;  %v219_v33 = vsel %vm1182_vm0, %v1172_v4, 0.0  ;;  %921 = vmatpush.msk.msra.mxu0 %vm225_vm1, %v218_v37  ;;  %v940_v4 = vld [vmem:[%s1325_s1 + $0x20] sm:$0xff] }
  0x24   : > { %923 = vmatpush.msk.msra.mxu1 %vm225_vm1, %v219_v33  ;;  %922 = vmatmul.msk.f32.vlgmr.msra.gmra.mxu0 %vm221_vm5, %v220_v42  ;;  %v960_v33 = vld [vmem:[%s1325_s1 + $0x40] sm:$0xff] }
  0x25   : > { %924 = vmatmul.msk.f32.vlgmr.msra.gmra.mxu1 %vm221_vm5, %v220_v42 }
  0x28   : > { %v350_v5 = vld.sshfl [vmem:[#allocation1 + $0x10] sm:$0xff pattern:$0x75316420] }
  0x29   : > { %355 = vrot.lane.b32.xlu2 %v350_v5, %s1086_s30  ;;  %419 = vst [vmem:[#allocation1 + $0x10] ss:$2 sm:$0xff] %v170_v0 }
  0x2a   : > { %v280_v6 = vld.sshfl [vmem:[#allocation1] sm:$0xff pattern:$0x75316420]  ;;  %v281_v7 = vld.sshfl [vmem:[#allocation1 + $0x8] sm:$0xff pattern:$0x75316420] }
  0x2b   : > { %283 = vrot.lane.b32.xlu0 %v280_v6, %s1085_s29  ;;  %345 = vst [vmem:[#allocation1] ss:$2 sm:$0xff] %v1167_v1 }
  0x30   : > { %v422_v8 = vld.sshfl [vmem:[#allocation1 + $0x10] sm:$0xff pattern:$0x75316420] }
  0x31   : > { %493 = vst [vmem:[#allocation1 + $0x10] ss:$2 sm:$0xff] %v170_v0 }
  0x32   : > { %v348_v9 = vld.sshfl [vmem:[#allocation1] sm:$0xff pattern:$0x75316420]  ;;  %v349_v10 = vld.sshfl [vmem:[#allocation1 + $0x8] sm:$0xff pattern:$0x75316420] }
  0x33   : > { %285 = vrot.lane.b32.xlu0 %v281_v7, %s1085_s29  ;;  %351 = vrot.lane.b32.xlu1 %v348_v9, %s1086_s30  ;;  %417 = vst [vmem:[#allocation1] ss:$2 sm:$0xff] %v1167_v1  ;;  %s855_s29 = sshll.u32 %s851_s26, 4  ;;  %s856_s29 = int_to_ptr.hbm [resolvable:$true] %s855_s29 }
  0x34   : > { %353 = vrot.lane.b32.xlu2 %v349_v10, %s1086_s30  ;;  %s1035_s30 = sshra.s32 %s856_s29, 4  ;;  %s1036_s30 = int_to_ptr.hbm [resolvable:$true] %s1035_s30 }
  0x35   : > { %p1042_p0 = scmp.lt.s32.totalorder %s1036_s30, %s1327_s3 }
  0x38   : > { %v496_v11 = vld.sshfl [vmem:[#allocation1 + $0x10] sm:$0xff pattern:$0x75316420] }
  0x39   : > { %557 = vst [vmem:[#allocation1 + $0x10] ss:$2 sm:$0xff] %v170_v0 }
  0x3a   : > { %v421_v12 = vld.sshfl [vmem:[#allocation1 + $0x8] sm:$0xff pattern:$0x75316420]  ;;  %v420_v13 = vld.sshfl [vmem:[#allocation1] sm:$0xff pattern:$0x75316420] }
  0x3b   : > { %425 = vrot.lane.b32.xlu1 %v421_v12, %s1087_s4  ;;  %423 = vrot.lane.b32.xlu0 %v420_v13, %s1087_s4  ;;  %491 = vst [vmem:[#allocation1] ss:$2 sm:$0xff] %v1167_v1 }
  0x3c   : > { %427 = vrot.lane.b32.xlu2 %v422_v8, %s1087_s4  ;;  %s1037_s4 = scalar_lea.hbm %s1036_s30, 16 }
  0x3d   : > { %p1038_p11 = scmp.ne.s32.totalorder %s1036_s30, %s1037_s4 }
  0x3f   : > { %p1039_p12 = pnand %p1038_p11, %p1152_p5 }
  0x40   : > { %v560_v14 = vld.sshfl [vmem:[#allocation1 + $0x10] sm:$0xff pattern:$0x75316420] }
  0x41   : > { %629 = vst [vmem:[#allocation1 + $0x10] ss:$2 sm:$0xff] %v170_v0  ;;  %p1040_p13 = pneg %p1039_p12 }
  0x42   : > { %v495_v15 = vld.sshfl [vmem:[#allocation1 + $0x8] sm:$0xff pattern:$0x75316420]  ;;  %v494_v16 = vld.sshfl [vmem:[#allocation1] sm:$0xff pattern:$0x75316420] }
  0x43   : > { %499 = vrot.lane.b32.xlu1 %v495_v15, %s1088_s5  ;;  %497 = vrot.lane.b32.xlu0 %v494_v16, %s1088_s5  ;;  %555 = vst [vmem:[#allocation1] ss:$2 sm:$0xff] %v1167_v1 }
  0x44   : > { %501 = vrot.lane.b32.xlu2 %v496_v11, %s1088_s5  ;;  %v945_v11 = vld [vmem:[%s1325_s1 + $0x28] sm:$0xff] }
  0x48   : > { %v632_v17 = vld.sshfl [vmem:[#allocation1 + $0x10] sm:$0xff pattern:$0x75316420] }
  0x49   : > { %703 = vst [vmem:[#allocation1 + $0x10] ss:$2 sm:$0xff] %v170_v0 }
  0x4a   : > { %v559_v18 = vld.sshfl [vmem:[#allocation1 + $0x8] sm:$0xff pattern:$0x75316420]  ;;  %v558_v19 = vld.sshfl [vmem:[#allocation1] sm:$0xff pattern:$0x75316420] }
  0x4b   : > { %563 = vrot.lane.b32.xlu1 %v559_v18, %s1089_s6  ;;  %561 = vrot.lane.b32.xlu0 %v558_v19, %s1089_s6  ;;  %627 = vst [vmem:[#allocation1] ss:$2 sm:$0xff] %v1167_v1  ;;  %v950_v19 = vld [vmem:[%s1325_s1 + $0x30] sm:$0xff] }
  0x4c   : > { %565 = vrot.lane.b32.xlu2 %v560_v14, %s1089_s6 }
  0x50   : > { %v706_v20 = vld.sshfl [vmem:[#allocation1 + $0x10] sm:$0xff pattern:$0x75316420] }
  0x51   : > { %767 = vst [vmem:[#allocation1 + $0x10] ss:$2 sm:$0xff] %v170_v0 }
  0x52   : > { %v631_v21 = vld.sshfl [vmem:[#allocation1 + $0x8] sm:$0xff pattern:$0x75316420]  ;;  %v630_v22 = vld.sshfl [vmem:[#allocation1] sm:$0xff pattern:$0x75316420] }
  0x53   : > { %635 = vrot.lane.b32.xlu1 %v631_v21, %s1090_s7  ;;  %633 = vrot.lane.b32.xlu0 %v630_v22, %s1090_s7  ;;  %701 = vst [vmem:[#allocation1] ss:$2 sm:$0xff] %v1167_v1 }
  0x54   : > { %637 = vrot.lane.b32.xlu2 %v632_v17, %s1090_s7  ;;  %s1041_s7 = scalar_lea.hbm %s1327_s3, 32 }
  0x55   : > { %p1043_p1 = scmp.lt.s32.totalorder %s1041_s7, %s1037_s4 }
  0x57   : > { %p1044_p2 = por %p1043_p1, %p1042_p0 }
  0x58   : > { %v770_v25 = vld.sshfl [vmem:[#allocation1 + $0x10] sm:$0xff pattern:$0x75316420] }
  0x59   : > { %p1045_p3 = pnand %p1044_p2, %p1040_p13 }
  0x5a   : > { %v705_v23 = vld.sshfl [vmem:[#allocation1 + $0x8] sm:$0xff pattern:$0x75316420]  ;;  %v704_v24 = vld.sshfl [vmem:[#allocation1] sm:$0xff pattern:$0x75316420] }
  0x5b   : > { %709 = vrot.lane.b32.xlu1 %v705_v23, %s1091_s8  ;;  %707 = vrot.lane.b32.xlu0 %v704_v24, %s1091_s8  ;;  %765 = vst [vmem:[#allocation1] ss:$2 sm:$0xff] %v1167_v1 }
  0x5c   : > { %711 = vrot.lane.b32.xlu2 %v706_v20, %s1091_s8 }
  0x62   : > { %v769_v26 = vld.sshfl [vmem:[#allocation1 + $0x8] sm:$0xff pattern:$0x75316420]  ;;  %v768_v27 = vld.sshfl [vmem:[#allocation1] sm:$0xff pattern:$0x75316420] }
  0x63   : > { %773 = vrot.lane.b32.xlu1 %v769_v26, %s1092_s9  ;;  %771 = vrot.lane.b32.xlu0 %v768_v27, %s1092_s9 }
  0x64   : > { %775 = vrot.lane.b32.xlu2 %v770_v25, %s1092_s9  ;;  %v955_v25 = vld [vmem:[%s1325_s1 + $0x38] sm:$0xff] }
  0x6b   : > { %205 = vperm.xlu0 %1020, %v202_v48  }
  0x83   : > { %v356_v35 = vpop.permute.xlu2 %355 }
  0x8e   : > { %v354_v39 = vpop.permute.xlu2 %353 }
  0x8f   : > { %v359_v40 = vsel %vm357_vm3, %v354_v39, %v356_v35 }
  0x90   : > { %v363_v41 = vsel %vm1198_vm4, %v359_v40, 0.0 }
  0x91   : > { %933 = vmatpush.msk.msrb.mxu1 %vm225_vm1, %v363_v41 }
  0x92   : > { %934 = vmatmul.msk.f32.vlgmr.msrb.gmra.mxu1 %vm221_vm5, %v930_v43 }
  0x93   : > { %v288_v44 = vpop.permute.xlu1 %287 }
  0x96   : > { %v428_v46 = vpop.permute.xlu2 %427 }
  0x9d   : > { %v284_v45 = vpop.permute.xlu0 %283 }
  0x9e   : > { %v502_v57 = vpop.permute.xlu2 %501 }
  0xa1   : > { %v249_v36 = vpop.f32.mrf.mxu0 }
  0xa2   : > { %v269_v37 = vpop.f32.mrf.mxu1 }
  0xa5   : > { %v286_v50 = vpop.permute.xlu0 %285  ;;  %v352_v51 = vpop.permute.xlu1 %351 }
  0xa6   : > { %v358_v53 = vsel %vm357_vm3, %v352_v51, %v354_v39  ;;  %v290_v54 = vsel %vm289_vm6, %v284_v45, %v286_v50  ;;  %v291_v55 = vsel %vm289_vm6, %v286_v50, %v288_v44  ;;  %v566_v1 = vpop.permute.xlu2 %565 }
  0xa7   : > { %926 = vmatpush.msk.msra.mxu2 %vm225_vm1, %v290_v54  ;;  %928 = vmatpush.msk.msra.mxu3 %vm225_vm1, %v291_v55  ;;  %v362_v56 = vsel %vm1218_vm7, %v358_v53, 0.0 }
  0xa8   : > { %931 = vmatpush.msk.msrb.mxu0 %vm225_vm1, %v362_v56  ;;  %927 = vmatmul.msk.f32.vlgmr.msra.gmra.mxu2 %vm221_vm5, %v925_v52 }
  0xa9   : > { %929 = vmatmul.msk.f32.vlgmr.msra.gmra.mxu3 %vm221_vm5, %v925_v52  ;;  %932 = vmatmul.msk.f32.vlgmr.msrb.gmra.mxu0 %vm221_vm5, %v930_v43 }
  0xad   : > { %v426_v58 = vpop.permute.xlu1 %425  ;;  %v424_v59 = vpop.permute.xlu0 %423 }
  0xae   : > { %v431_v60 = vsel %vm429_vm8, %v426_v58, %v428_v46  ;;  %v430_v61 = vsel %vm429_vm8, %v424_v59, %v426_v58  ;;  %v638_v14 = vpop.permute.xlu2 %637 }
  0xaf   : > { %v434_v63 = vsel %vm1190_vm2, %v430_v61, 0.0  ;;  %v435_v0 = vsel %vm1182_vm0, %v431_v60, 0.0 }
  0xb0   : > { %936 = vmatpush.msk.msrb.mxu2 %vm225_vm1, %v434_v63  ;;  %938 = vmatpush.msk.msrb.mxu3 %vm225_vm1, %v435_v0 }
  0xb1   : > { %937 = vmatmul.msk.f32.vlgmr.msrb.gmra.mxu2 %vm221_vm5, %v935_v62  ;;  %939 = vmatmul.msk.f32.vlgmr.msrb.gmra.mxu3 %vm221_vm5, %v935_v62 }
  0xb5   : > { %v500_v2 = vpop.permute.xlu1 %499  ;;  %v498_v3 = vpop.permute.xlu0 %497 }
  0xb6   : > { %v505_v5 = vsel %vm503_vm9, %v500_v2, %v502_v57  ;;  %v504_v6 = vsel %vm503_vm9, %v498_v3, %v500_v2  ;;  %v712_v22 = vpop.permute.xlu2 %711 }
  0xb7   : > { %941 = vmatpush.msk.msra.mxu0 %vm225_vm1, %v504_v6  ;;  %943 = vmatpush.msk.msra.mxu1 %vm225_vm1, %v505_v5 }
  0xb8   : > { %942 = vmatmul.msk.f32.vlgmr.msra.gmra.mxu0 %vm221_vm5, %v940_v4  ;;  %944 = vmatmul.msk.f32.vlgmr.msra.gmra.mxu1 %vm221_vm5, %v940_v4 }
  0xbd   : > { %v564_v7 = vpop.permute.xlu1 %563  ;;  %v562_v8 = vpop.permute.xlu0 %561 }
  0xbe   : > { %v569_v9 = vsel %vm567_vm10, %v564_v7, %v566_v1  ;;  %v568_v10 = vsel %vm567_vm10, %v562_v8, %v564_v7  ;;  %v776_v28 = vpop.permute.xlu2 %775 }
  0xbf   : > { %v573_v12 = vsel %vm1198_vm4, %v569_v9, 0.0  ;;  %v572_v13 = vsel %vm1218_vm7, %v568_v10, 0.0 }
  0xc0   : > { %946 = vmatpush.msk.msra.mxu2 %vm225_vm1, %v572_v13  ;;  %948 = vmatpush.msk.msra.mxu3 %vm225_vm1, %v573_v12 }
  0xc1   : > { %947 = vmatmul.msk.f32.vlgmr.msra.gmra.mxu2 %vm221_vm5, %v945_v11  ;;  %949 = vmatmul.msk.f32.vlgmr.msra.gmra.mxu3 %vm221_vm5, %v945_v11 }
  0xc5   : > { %v636_v15 = vpop.permute.xlu1 %635  ;;  %v634_v16 = vpop.permute.xlu0 %633 }
  0xc6   : > { %v641_v17 = vsel %vm639_vm11, %v636_v15, %v638_v14  ;;  %v640_v18 = vsel %vm639_vm11, %v634_v16, %v636_v15 }
  0xc7   : > { %v645_v20 = vsel %vm1182_vm0, %v641_v17, 0.0  ;;  %v644_v21 = vsel %vm1190_vm2, %v640_v18, 0.0 }
  0xc8   : > { %951 = vmatpush.msk.msrb.mxu0 %vm225_vm1, %v644_v21  ;;  %953 = vmatpush.msk.msrb.mxu1 %vm225_vm1, %v645_v20 }
  0xc9   : > { %952 = vmatmul.msk.f32.vlgmr.msrb.gmra.mxu0 %vm221_vm5, %v950_v19  ;;  %954 = vmatmul.msk.f32.vlgmr.msrb.gmra.mxu1 %vm221_vm5, %v950_v19 }
  0xcd   : > { %v710_v23 = vpop.permute.xlu1 %709  ;;  %v708_v24 = vpop.permute.xlu0 %707 }
  0xce   : > { %v715_v26 = vsel %vm713_vm12, %v710_v23, %v712_v22  ;;  %v714_v27 = vsel %vm713_vm12, %v708_v24, %v710_v23 }
  0xcf   : > { %956 = vmatpush.msk.msrb.mxu2 %vm225_vm1, %v714_v27  ;;  %958 = vmatpush.msk.msrb.mxu3 %vm225_vm1, %v715_v26 }
  0xd0   : > { %957 = vmatmul.msk.f32.vlgmr.msrb.gmra.mxu2 %vm221_vm5, %v955_v25  ;;  %959 = vmatmul.msk.f32.vlgmr.msrb.gmra.mxu3 %vm221_vm5, %v955_v25 }
  0xd5   : > { %v774_v29 = vpop.permute.xlu1 %773  ;;  %v772_v30 = vpop.permute.xlu0 %771 }
  0xd6   : > { %v779_v31 = vsel %vm777_vm13, %v774_v29, %v776_v28  ;;  %v778_v32 = vsel %vm777_vm13, %v772_v30, %v774_v29 }
  0xd7   : > { %v783_v34 = vsel %vm1198_vm4, %v779_v31, 0.0  ;;  %v782_v35 = vsel %vm1218_vm7, %v778_v32, 0.0 }
  0xd8   : > { %961 = vmatpush.msk.msra.mxu0 %vm225_vm1, %v782_v35  ;;  %963 = vmatpush.msk.msra.mxu1 %vm225_vm1, %v783_v34 }
  0xd9   : > { %962 = vmatmul.msk.f32.vlgmr.msra.gmra.mxu0 %vm221_vm5, %v960_v33  ;;  %964 = vmatmul.msk.f32.vlgmr.msra.gmra.mxu1 %vm221_vm5, %v960_v33 }
  0xdd   : > { %v206_v41 = vpop.permute.xlu0 %205 }
  0xde   : > { %v272_v38 = vadd.f32 %v249_v36, %v206_v41  ;;  %v273_v44 = vadd.f32 %v269_v37, %v206_v41 }
 0x10f   : > { %v412_v43 = vpop.f32.mrf.mxu1 }
 0x126   : > { %v392_v42 = vpop.f32.mrf.mxu0 }
 0x12b   : > { %v316_v39 = vpop.f32.mrf.mxu2 }
 0x12c   : > { %v336_v40 = vpop.f32.mrf.mxu3  ;;  %v339_v45 = vadd.f32 %v316_v39, %v272_v38 }
 0x12d   : > { %v340_v46 = vadd.f32 %v336_v40, %v273_v44 }
 0x12e   : > { %v415_v49 = vadd.f32 %v392_v42, %v339_v45 }
 0x12f   : > { %v416_v50 = vadd.f32 %v412_v43, %v340_v46 }
 0x134   : > { %v464_v47 = vpop.f32.mrf.mxu2  ;;  %v484_v48 = vpop.f32.mrf.mxu3 }
 0x135   : > { %v530_v51 = vpop.f32.mrf.mxu0  ;;  %v550_v52 = vpop.f32.mrf.mxu1  ;;  %v487_v53 = vadd.f32 %v464_v47, %v415_v49  ;;  %v488_v54 = vadd.f32 %v484_v48, %v416_v50 }
 0x137   : > { %v553_v57 = vadd.f32 %v530_v51, %v487_v53  ;;  %v554_v58 = vadd.f32 %v550_v52, %v488_v54 }
 0x144   : > { %v602_v55 = vpop.f32.mrf.mxu2  ;;  %v622_v56 = vpop.f32.mrf.mxu3 }
 0x145   : > { %v625_v59 = vadd.f32 %v602_v55, %v553_v57  ;;  %v626_v60 = vadd.f32 %v622_v56, %v554_v58 }
 0x146   : > { %v674_v61 = vpop.f32.mrf.mxu0  ;;  %v694_v62 = vpop.f32.mrf.mxu1 }
 0x147   : > { %v697_v63 = vadd.f32 %v674_v61, %v625_v59  ;;  %v698_v0 = vadd.f32 %v694_v62, %v626_v60 }
 0x153   : > { %v740_v1 = vpop.f32.mrf.mxu2  ;;  %v760_v2 = vpop.f32.mrf.mxu3 }
 0x154   : > { %v763_v3 = vadd.f32 %v740_v1, %v697_v63  ;;  %v764_v4 = vadd.f32 %v760_v2, %v698_v0 }
 0x156   : > { %v812_v5 = vpop.f32.mrf.mxu0  ;;  %v832_v6 = vpop.f32.mrf.mxu1 }
 0x157   : > { %v835_v7 = vadd.f32 %v812_v5, %v763_v3  ;;  %v836_v8 = vadd.f32 %v832_v6, %v764_v4 }
 0x159   : > { %837 = vst [vmem:[%s163_s27] sm:$0xff] %v835_v7 }
 0x15a   : > { %838 = vst [vmem:[%s163_s27 + $0x8] sm:$0xff] %v836_v8 }
 0x15b   : > { %1048 = shalt.err (!%p1045_p3)
}
 0x15c   : > { %972 = dma.vmem_to_hbm [thread:$0]  (%p1152_p5), %s854_s28, 256, %s856_s29, %s840_s16  }
 0x15d PF: > { %p978_p4 = scmp.ge.s32.totalorder %s1083_s15, 2  ;;  %s867_s10 = sand.u32 1, %s1071_s12  }
 0x15e   : > { %s868_s11 = scalar_lea.sflag [#allocation3], %s867_s10 }
 0x15f   : > { %p975_p7 = pnand %p978_p4, %p1156_p6 }
 0x161   : > { %p976_p8 = pneg %p975_p7 }
 0x163   : > { %1066 = dma.done.wait (%p976_p8), %s868_s11, 256  }
 0x164   : > { %1068 = vsyncadd (%p976_p8), %s868_s11, 4294967040  ;;  %p13_p9 = scmp.ge.s32.totalorder %s1139_s18, 4   ;;  %s1338_s12 = smov %s1075_s13 }
 0x165   : > { %s1339_s13 = smov %s1079_s14  ;;  %s1340_s14 = smov %s1150_s21 }
 0x166   : > { %s1341_s15 = smov %s1139_s18  ;;  %15 = sbr.rel (!%p13_p9) target bundleno = 3 (0x3), region = 83 }
 0x16b   :  { %874 = vsyncpa [#allocation3], 1 }
 0x16c   :  { %876 = vsyncpa [#allocation3 + $0x1], 1 }

</bundles_post_ra>
